<compile_context>
chip_gen: v7x
topology: tpu7x:2x2x1
jax: 0.10.0
libtpu: 0.0.40
codegen_flags: <defaults>
</compile_context>

<pallas_src>
import functools
import math

import jax
import jax.numpy as jnp
from jax import lax
from jax.experimental import pallas as pl
from jax.experimental.pallas import tpu as pltpu

LANE = 128
_SMALL_SINGLE_BLOCK = 2 << 20     # fused path with a single grid step only below this


def _round_up(x, m):
    return ((x + m - 1) // m) * m


def _round_down(x, m):
    return (x // m) * m


def _divisors(n):
    return [d for d in range(1, n + 1) if n % d == 0]


def _vmem_budgets():
    """Generation-aware VMEM budgets (v5e/v6e: 128 MiB, v7x: 64 MiB per TC)."""
    try:
        cap = int(pltpu.get_tpu_info().vmem_capacity_bytes)
    except Exception:
        cap = 64 << 20                         # conservative fallback
    if cap >= (96 << 20):                      # v5e / v6e
        fused_budget = 96 << 20                # 2x(in)+2x(out) buffered bytes
        clamp = cap - (16 << 20)               # ~112 MiB scoped-vmem limit
        split_slab = 8 << 20
    else:                                      # v7x
        fused_budget = cap // 2                # ~32 MiB buffered
        clamp = max(cap - (12 << 20), 16 << 20)  # ~52 MiB: headroom below 64
        split_slab = 4 << 20
    return fused_budget, clamp, split_slab


def _channel_gate(mean_f32, w_ref):
    """Conv1d(k=3, pad=1, no bias) across the channel (lane) axis + sigmoid.

    mean_f32: (TB, C) f32.  out[c] = w0*m[c-1] + w1*m[c] + w2*m[c+1] (zero pad).
    """
    tb, c = mean_f32.shape
    idx = lax.broadcasted_iota(jnp.int32, (tb, c), 1)
    left = jnp.where(idx > 0, jnp.roll(mean_f32, 1, axis=-1), 0.0)
    right = jnp.where(idx < c - 1, jnp.roll(mean_f32, -1, axis=-1), 0.0)
    y = w_ref[0] * left + w_ref[1] * mean_f32 + w_ref[2] * right
    return jax.nn.sigmoid(y)


# ---------------------------------------------------------------------------
# Fused single-pass kernel: one (tb, C, HW) block per grid step.  No padding;
# the ragged (non-128) tail is one static chunk.
# ---------------------------------------------------------------------------
def _eca_fused_kernel(w_ref, x_ref, o_ref, *, hw_chunk, n_full, tail):
    tb, c, hw = x_ref.shape
    inv_hw = 1.0 / hw

    # Pass 1: per-channel spatial sum, lane-width f32 accumulator (VPU adds),
    # single cross-lane reduce at the end.
    total = jnp.zeros((tb, c), jnp.float32)
    if n_full > 0:
        lanes_per_chunk = hw_chunk // LANE

        def sum_body(i, acc):
            base = i * hw_chunk
            for k in range(lanes_per_chunk):
                s = pl.multiple_of(base + k * LANE, LANE)
                acc = acc + x_ref[:, :, pl.ds(s, LANE)].astype(jnp.float32)
            return acc

        acc = lax.fori_loop(0, n_full, sum_body,
                            jnp.zeros((tb, c, LANE), jnp.float32),
                            unroll=n_full <= 4)
        total = jnp.sum(acc, axis=-1)
    if tail > 0:
        ts = n_full * hw_chunk
        total = total + jnp.sum(
            x_ref[:, :, pl.ds(ts, tail)].astype(jnp.float32), axis=-1)

    gate = _channel_gate(total * inv_hw, w_ref)            # (tb, C) f32
    gate_b = gate.astype(o_ref.dtype)[:, :, None]          # hoisted cast + bcast

    # Pass 2: gated write in the native dtype; only the tail store is masked.
    if n_full > 0:
        def write_body(i, carry):
            s = pl.multiple_of(i * hw_chunk, LANE)
            o_ref[:, :, pl.ds(s, hw_chunk)] = (
                x_ref[:, :, pl.ds(s, hw_chunk)] * gate_b)
            return carry

        lax.fori_loop(0, n_full, write_body, 0, unroll=n_full <= 4)
    if tail > 0:
        ts = n_full * hw_chunk
        o_ref[:, :, pl.ds(ts, tail)] = x_ref[:, :, pl.ds(ts, tail)] * gate_b


# ---------------------------------------------------------------------------
# Split path, pass A: tiled reduction over HW -> (B, C) sigmoid gate.
# ---------------------------------------------------------------------------
def _eca_reduce_kernel(w_ref, x_ref, gate_ref, sum_ref, *, hw, mask_tail):
    j = pl.program_id(1)

    @pl.when(j == 0)
    def _():
        sum_ref[...] = jnp.zeros_like(sum_ref)

    x = x_ref[...].astype(jnp.float32)
    if mask_tail:
        tb, c, hw_tile = x_ref.shape
        lane = lax.broadcasted_iota(jnp.int32, (tb, c, hw_tile), 2)
        x = jnp.where(j * hw_tile + lane < hw, x, 0.0)
    sum_ref[...] += jnp.sum(x, axis=-1)

    @pl.when(j == pl.num_programs(1) - 1)
    def _():
        gate_ref[...] = _channel_gate(sum_ref[...] * (1.0 / hw), w_ref)


# ---------------------------------------------------------------------------
# Split path, pass B: fully parallel row-folded elementwise apply.
# ---------------------------------------------------------------------------
def _eca_apply_kernel(gate_ref, x_ref, o_ref):
    o_ref[...] = x_ref[...] * gate_ref[...].astype(x_ref.dtype)


# ---------------------------------------------------------------------------
# Tiling helpers.
# ---------------------------------------------------------------------------
def _fused_chunking(rows, hw, itemsize):
    """In-kernel chunking of the HW axis: (hw_chunk, n_full, tail)."""
    del itemsize
    hw_floor = (hw // LANE) * LANE
    if hw_floor == 0:
        return 0, 0, hw
    cap = max(LANE, _round_down((2 << 20) // max(1, rows * 4), LANE))
    hw_chunk = min(hw_floor, 1024, cap)
    n_full = hw // hw_chunk
    tail = hw - n_full * hw_chunk
    return hw_chunk, n_full, tail


def _split_pass_a_tiles(B, C, HW, itemsize, slab):
    # Smallest divisor of B that is a multiple of 8, else B: keeps the (tb, C)
    # gate block lowering-legal (first block dim multiple of 8 or == B).
    tb = B
    for d in _divisors(B):
        if d % 8 == 0:
            tb = d
            break
    max_lanes = max(LANE, _round_down(slab // max(1, tb * C * itemsize), LANE))
    cand = min(max_lanes, 4096)
    hw_tile = HW if cand >= HW else cand          # full dim, or a 128-multiple
    return tb, hw_tile


def _split_pass_b_tiles(BC, HW, itemsize, slab):
    hw_tile = HW if HW <= 2048 else 2048          # full dim, or a 128-multiple
    rows = max(8, _round_down(slab // max(1, hw_tile * itemsize), 8))
    if rows >= BC:
        rows = BC                                  # full first dim
    return rows, hw_tile


# ---------------------------------------------------------------------------
# Wrapper.
# ---------------------------------------------------------------------------
def local_attention(x_nchw, conv_weight, *, force_split=False):
    """x_nchw: (B, C, H, W); conv_weight: (3,) (torch Conv1d weight[0, 0, :])."""
    B, C, H, W = x_nchw.shape
    HW = H * W
    dtype = x_nchw.dtype
    itemsize = jnp.dtype(dtype).itemsize
    w = jnp.asarray(conv_weight, jnp.float32).reshape(-1)

    fused_budget, clamp, split_slab = _vmem_budgets()
    per_batch = C * HW * itemsize

    # ---- fused single-pass path: read x once, write out once ----
    fused_tb = 0
    if not force_split:
        for tb in sorted(_divisors(B), reverse=True):
            if B // tb < 2:
                continue                           # keep >= 2 grid steps
            if 4 * tb * per_batch <= fused_budget:
                fused_tb = tb
                break
        if (fused_tb == 0 and B * per_batch <= _SMALL_SINGLE_BLOCK
                and 4 * B * per_batch <= fused_budget):
            fused_tb = B       # tiny workload: one step beats two launches

    if fused_tb:
        tb = fused_tb
        n_b = B // tb
        rows = tb * C
        hw_chunk, n_full, tail = _fused_chunking(rows, HW, itemsize)
        block_bytes = tb * per_batch
        vmem_limit = min(max(4 * block_bytes + (12 << 20), 16 << 20), clamp)
        x3 = x_nchw.reshape(B, C, HW)              # free reshape, no copy
        out = pl.pallas_call(
            functools.partial(_eca_fused_kernel, hw_chunk=hw_chunk,
                              n_full=n_full, tail=tail),
            out_shape=jax.ShapeDtypeStruct((B, C, HW), dtype),
            grid_spec=pltpu.PrefetchScalarGridSpec(
                num_scalar_prefetch=0,
                grid=(n_b,),
                in_specs=[
                    pl.BlockSpec(memory_space=pltpu.MemorySpace.SMEM),   # weights
                    pl.BlockSpec((tb, C, HW), lambda b: (b, 0, 0)),      # x
                ],
                out_specs=pl.BlockSpec((tb, C, HW), lambda b: (b, 0, 0)),
            ),
            compiler_params=pltpu.CompilerParams(
                dimension_semantics=("parallel",),
                vmem_limit_bytes=vmem_limit,
            ),
        )(w, x3)
        return out.reshape(B, C, H, W)

    # ---- two-pass split path: (A) reduce -> gate, (B) parallel apply ----
    x3 = x_nchw.reshape(B, C, HW)
    tb_a, hw_tile_a = _split_pass_a_tiles(B, C, HW, itemsize, split_slab)
    n_hw_a = pl.cdiv(HW, hw_tile_a)
    mask_tail = (HW % hw_tile_a) != 0
    block_a = tb_a * C * hw_tile_a * itemsize
    vmem_a = min(max(2 * block_a + 2 * tb_a * C * hw_tile_a * 4 + (8 << 20),
                     16 << 20), clamp)
    gate = pl.pallas_call(
        functools.partial(_eca_reduce_kernel, hw=HW, mask_tail=mask_tail),
        out_shape=jax.ShapeDtypeStruct((B, C), jnp.float32),
        grid_spec=pltpu.PrefetchScalarGridSpec(
            num_scalar_prefetch=0,
            grid=(B // tb_a, n_hw_a),
            in_specs=[
                pl.BlockSpec(memory_space=pltpu.MemorySpace.SMEM),
                pl.BlockSpec((tb_a, C, hw_tile_a), lambda b, j: (b, 0, j)),
            ],
            out_specs=pl.BlockSpec((tb_a, C), lambda b, j: (b, 0)),
            scratch_shapes=[pltpu.VMEM((tb_a, C), jnp.float32)],
        ),
        compiler_params=pltpu.CompilerParams(
            dimension_semantics=("parallel", "arbitrary"),
            vmem_limit_bytes=vmem_a,
        ),
    )(w, x3)

    BC = B * C
    x2 = x_nchw.reshape(BC, HW)                    # free reshape, no copy
    gate2 = gate.reshape(BC, 1)                    # tiny; not an HBM pass over x
    rb, hw_tile_b = _split_pass_b_tiles(BC, HW, itemsize, split_slab)
    block_b = rb * hw_tile_b * itemsize
    vmem_b = min(max(5 * block_b + (8 << 20), 16 << 20), clamp)
    out2 = pl.pallas_call(
        _eca_apply_kernel,
        out_shape=jax.ShapeDtypeStruct((BC, HW), dtype),
        grid_spec=pltpu.PrefetchScalarGridSpec(
            num_scalar_prefetch=0,
            grid=(pl.cdiv(BC, rb), pl.cdiv(HW, hw_tile_b)),
            in_specs=[
                pl.BlockSpec((rb, 1), lambda r, j: (r, 0)),              # gate
                pl.BlockSpec((rb, hw_tile_b), lambda r, j: (r, j)),      # x
            ],
            out_specs=pl.BlockSpec((rb, hw_tile_b), lambda r, j: (r, j)),
        ),
        compiler_params=pltpu.CompilerParams(
            dimension_semantics=("parallel", "parallel"),
            vmem_limit_bytes=vmem_b,
        ),
    )(gate2, x2)
    return out2.reshape(B, C, H, W)


def local_attention_ref(x_nchw, conv_weight):
    """Pure-JAX reference matching the PyTorch forward."""
    mean = jnp.mean(x_nchw.astype(jnp.float32), axis=(2, 3))   # (B, C)
    padded = jnp.pad(mean, ((0, 0), (1, 1)))                   # (B, C+2)
    yconv = (conv_weight[0] * padded[:, :-2]
             + conv_weight[1] * padded[:, 1:-1]
             + conv_weight[2] * padded[:, 2:])                 # (B, C)
    gate = jax.nn.sigmoid(yconv)[:, :, None, None]             # (B, C, 1, 1)
    return (x_nchw.astype(jnp.float32) * gate).astype(x_nchw.dtype)


if __name__ == "__main__":
    key = jax.random.PRNGKey(0)
    kx, kw = jax.random.split(key)

    B, C, H, W = 2, 4, 16, 16
    x = jax.random.normal(kx, (B, C, H, W), dtype=jnp.float32)

    # Conv1d(1, 1, kernel_size=3, bias=False) weight (torch shape (1, 1, 3)).
    bound = 1.0 / math.sqrt(3.0)
    conv_w = jax.random.uniform(kw, (3,), dtype=jnp.float32,
                                minval=-bound, maxval=bound)

    # 1) Fused single-pass path (multi-step grid over batches), 128-aligned HW.
    ref = local_attention_ref(x, conv_w)
    out = jax.block_until_ready(local_attention(x, conv_w))
    assert out.shape == (B, C, H, W)
    assert jnp.allclose(out, ref, atol=1e-5, rtol=1e-5), "fused mismatch"

    # 2) Fused path with a ragged spatial extent (HW = 225): no padding, the
    #    non-128 tail is handled inside the kernel.
    xr = jax.random.normal(kx, (2, 4, 15, 15), dtype=jnp.float32)
    refr = local_attention_ref(xr, conv_w)
    outr = jax.block_until_ready(local_attention(xr, conv_w))
    assert jnp.allclose(outr, refr, atol=1e-5, rtol=1e-5), "ragged mismatch"

    # 3) Two-pass split path (reduce -> parallel apply), forced for coverage.
    x2 = jax.random.normal(kx, (2, 8, 16, 16), dtype=jnp.float32)
    ref2 = local_attention_ref(x2, conv_w)
    out2 = jax.block_until_ready(local_attention(x2, conv_w, force_split=True))
    assert jnp.allclose(out2, ref2, atol=1e-5, rtol=1e-5), "split mismatch"

    print("KERNEL_OK")
</pallas_src>

<mosaic_0001>
module attributes {stable_mosaic.version = 11 : i64} {
  func.func @_eca_fused_kernel(%arg0: i32, %arg1: memref<3xf32, #tpu.memory_space<smem>>, %arg2: memref<1x4x256xf32, #tpu.memory_space<vmem>>, %arg3: memref<1x4x256xf32, #tpu.memory_space<vmem>>) attributes {dimension_semantics = [#tpu.dimension_semantics<parallel>], iteration_bounds = array<i64: 2>, scalar_prefetch = 0 : i64, scratch_operands = 0 : i64, tpu.core_type = #tpu.core_type<tc>, window_params = [{transform_indices = @transform_0, window_bounds = array<i64: 3>}, {transform_indices = @transform_1, window_bounds = array<i64: 1, 4, 256>}, {transform_indices = @transform_2, window_bounds = array<i64: 1, 4, 256>}]} {
    %cst = arith.constant 0.000000e+00 : f32
    %0 = vector.broadcast %cst : f32 to vector<1x4x128xf32>
    %c0_i32 = arith.constant 0 : i32
    %c256_i32 = arith.constant 256 : i32
    %1 = arith.muli %c0_i32, %c256_i32 : i32
    %c0_i32_0 = arith.constant 0 : i32
    %2 = arith.addi %1, %c0_i32_0 : i32
    %3 = tpu.assume_multiple %2, 128 : i32
    %c0 = arith.constant 0 : index
    %c0_1 = arith.constant 0 : index
    %4 = arith.index_cast %3 : i32 to index
    %5 = vector.load %arg2[%c0, %c0_1, %4] : memref<1x4x256xf32, #tpu.memory_space<vmem>>, vector<1x4x128xf32>
    %6 = arith.addf %0, %5 : vector<1x4x128xf32>
    %c128_i32 = arith.constant 128 : i32
    %7 = arith.addi %1, %c128_i32 : i32
    %8 = tpu.assume_multiple %7, 128 : i32
    %c0_2 = arith.constant 0 : index
    %c0_3 = arith.constant 0 : index
    %9 = arith.index_cast %8 : i32 to index
    %10 = vector.load %arg2[%c0_2, %c0_3, %9] : memref<1x4x256xf32, #tpu.memory_space<vmem>>, vector<1x4x128xf32>
    %11 = arith.addf %6, %10 : vector<1x4x128xf32>
    %c1_i32 = arith.constant 1 : i32
    %cst_4 = arith.constant dense<0.000000e+00> : vector<1x4xf32>
    %12 = vector.multi_reduction <add>, %11, %cst_4 [2] : vector<1x4x128xf32> to vector<1x4xf32>
    %cst_5 = arith.constant 3.906250e-03 : f32
    %13 = vector.broadcast %cst_5 : f32 to vector<1x4xf32>
    %14 = arith.mulf %12, %13 : vector<1x4xf32>
    %15 = tpu.iota {dimensions = array<i32: 1>} : vector<1x4xi32>
    %c0_i32_6 = arith.constant 0 : i32
    %16 = vector.broadcast %c0_i32_6 : i32 to vector<1x4xi32>
    %17 = arith.cmpi sgt, %15, %16 : vector<1x4xi32>
    %18 = vector.extract_strided_slice %14 {offsets = [0, 3], sizes = [1, 1], strides = [1, 1]} : vector<1x4xf32> to vector<1x1xf32>
    %19 = vector.extract_strided_slice %14 {offsets = [0, 0], sizes = [1, 3], strides = [1, 1]} : vector<1x4xf32> to vector<1x3xf32>
    %20 = tpu.concatenate %18, %19 in 1 : vector<1x1xf32>, vector<1x3xf32> -> vector<1x4xf32>
    %cst_7 = arith.constant 0.000000e+00 : f32
    %21 = vector.broadcast %cst_7 : f32 to vector<1x4xf32>
    %22 = arith.select %17, %20, %21 : vector<1x4xi1>, vector<1x4xf32>
    %c3_i32 = arith.constant 3 : i32
    %23 = vector.broadcast %c3_i32 : i32 to vector<1x4xi32>
    %24 = arith.cmpi slt, %15, %23 : vector<1x4xi32>
    %25 = vector.extract_strided_slice %14 {offsets = [0, 1], sizes = [1, 3], strides = [1, 1]} : vector<1x4xf32> to vector<1x3xf32>
    %26 = vector.extract_strided_slice %14 {offsets = [0, 0], sizes = [1, 1], strides = [1, 1]} : vector<1x4xf32> to vector<1x1xf32>
    %27 = tpu.concatenate %25, %26 in 1 : vector<1x3xf32>, vector<1x1xf32> -> vector<1x4xf32>
    %cst_8 = arith.constant 0.000000e+00 : f32
    %28 = vector.broadcast %cst_8 : f32 to vector<1x4xf32>
    %29 = arith.select %24, %27, %28 : vector<1x4xi1>, vector<1x4xf32>
    %c0_9 = arith.constant 0 : index
    %30 = memref.load %arg1[%c0_9] : memref<3xf32, #tpu.memory_space<smem>>
    %31 = vector.broadcast %30 : f32 to vector<1x4xf32>
    %32 = arith.mulf %31, %22 : vector<1x4xf32>
    %c1 = arith.constant 1 : index
    %33 = memref.load %arg1[%c1] : memref<3xf32, #tpu.memory_space<smem>>
    %34 = vector.broadcast %33 : f32 to vector<1x4xf32>
    %35 = arith.mulf %34, %14 : vector<1x4xf32>
    %36 = arith.addf %32, %35 : vector<1x4xf32>
    %c2 = arith.constant 2 : index
    %37 = memref.load %arg1[%c2] : memref<3xf32, #tpu.memory_space<smem>>
    %38 = vector.broadcast %37 : f32 to vector<1x4xf32>
    %39 = arith.mulf %38, %29 : vector<1x4xf32>
    %40 = arith.addf %36, %39 : vector<1x4xf32>
    %41 = arith.negf %40 : vector<1x4xf32>
    %42 = math.exp %41 : vector<1x4xf32>
    %cst_10 = arith.constant 1.000000e+00 : f32
    %43 = vector.broadcast %cst_10 : f32 to vector<1x4xf32>
    %44 = arith.addf %43, %42 : vector<1x4xf32>
    %45 = arith.divf %43, %44 : vector<1x4xf32>
    %46 = vector.shape_cast %45 : vector<1x4xf32> to vector<1x4x1xf32>
    %c0_i32_11 = arith.constant 0 : i32
    %c256_i32_12 = arith.constant 256 : i32
    %47 = arith.muli %c0_i32_11, %c256_i32_12 : i32
    %48 = tpu.assume_multiple %47, 128 : i32
    %c0_13 = arith.constant 0 : index
    %c0_14 = arith.constant 0 : index
    %49 = arith.index_cast %48 : i32 to index
    %50 = vector.load %arg2[%c0_13, %c0_14, %49] : memref<1x4x256xf32, #tpu.memory_space<vmem>>, vector<1x4x256xf32>
    %51 = vector.broadcast %46 : vector<1x4x1xf32> to vector<1x4x256xf32>
    %52 = arith.mulf %50, %51 : vector<1x4x256xf32>
    %c0_15 = arith.constant 0 : index
    %c0_16 = arith.constant 0 : index
    %53 = arith.index_cast %48 : i32 to index
    %54 = vector.load %arg3[%c0_15, %c0_16, %53] : memref<1x4x256xf32, #tpu.memory_space<vmem>>, vector<1x4x256xf32>
    tpu.vector_store %arg3[%c0_15, %c0_16, %53], %52 {strides = array<i32>} : memref<1x4x256xf32, #tpu.memory_space<vmem>>, vector<1x4x256xf32>,
    %c1_i32_17 = arith.constant 1 : i32
    return
  }
  func.func @transform_0(%arg0: i32) -> i32 {
    %c0_i32 = arith.constant 0 : i32
    %c0_i32_0 = arith.constant 0 : i32
    return %c0_i32 : i32
  }
  func.func @transform_1(%arg0: i32) -> (i32, i32, i32) {
    %c0_i32 = arith.constant 0 : i32
    %c0_i32_0 = arith.constant 0 : i32
    %c0_i32_1 = arith.constant 0 : i32
    return %arg0, %c0_i32, %c0_i32_0 : i32, i32, i32
  }
  func.func @transform_2(%arg0: i32) -> (i32, i32, i32) {
    %c0_i32 = arith.constant 0 : i32
    %c0_i32_0 = arith.constant 0 : i32
    %c0_i32_1 = arith.constant 0 : i32
    return %arg0, %c0_i32, %c0_i32_0 : i32, i32, i32
  }
}

</mosaic_0001>

<bundles_post_ra>
// kernel: tpu_custom_call.1
= control target key start
LH: loop header
LB: loop body
LE: loop exit
PB: predicated region body
PF: predicated region fallthrough
CT: control target
= control target key end

     0   :  { %7 = vsyncpa [#allocation5], 0  ;;  %s781_s0 = inlined_call_operand.hbm [shape: f32[3], index: 0, kind: input, shape index: {}]   ;;  %s782_s1 = inlined_call_operand.hbm [shape: f32[2,4,256], index: 1, kind: input, shape index: {}]   ;;  %s783_s2 = inlined_call_operand.hbm [shape: f32[2,4,256], index: 2, kind: output, shape index: {}]  }
   0x1   :  { %8 = vsyncpa [#allocation3], 0 }
   0x2   :  { %10 = vsyncpa [#allocation3 + $0x1], 0 }
   0x3   :  { %11 = vsyncpa [#allocation4], 0 }
   0x4   :  { %13 = vsyncpa [#allocation4 + $0x1], 0  ;;  %s567_s9 = smov 0   ;;  %s569_s10 = smov 0  }
   0x5   :  { %s571_s11 = smov 0   ;;  %s573_s12 = smov 0  }
   0x6 LB: > { %s588_s13 = sadd.s32 4294967295, %s546_s12   ;;  %s349_s14 = sadd.s32 4294967294, %s546_s12   ;;  %s546_s12 = sphi %s573_s12, %s804_s12   ;;  %s542_s11 = sphi %s571_s11, %s803_s11   ;;  %s538_s10 = sphi %s569_s10, %s802_s10   ;;  %s534_s9 = sphi %s567_s9, %s801_s9  }
   0x7   : > { %p60_p0 = scmp.ne.s32.totalorder %s538_s10, %s534_s9  ;;  %p784_p1 = scmp.eq.s32.totalorder %s588_s13, 0 }
   0x8   : > { %p90_p3 = scmp.eq.s32.totalorder %s349_s14, 1  ;;  %p350_p5 = scmp.ge.s32.totalorder %s546_s12, 1 }
   0x9   : > { %p597_p4 = por %p784_p1, %p60_p0  ;;  %p97_p7 = scmp.lt.s32.totalorder %s546_s12, 3 }
   0xa   : > { %p602_p6 = por %p90_p3, %p60_p0  ;;  %s613_s18 = sadd.s32 1, %s546_s12  }
   0xb   : > { %s787_s15 = scalar_select %p597_p4, 1, 0 }
   0xc   : > { %s788_s16 = scalar_select %p602_p6, 1, 0 }
   0xd   : > { %p607_p8 = pnand %p350_p5, %p97_p7  ;;  %s44_s19 = ssub.s32 %s546_s12, %s613_s18 }
   0xe   : > { %s47_s20 = sadd.s32 1, %s542_s11  ;;  %p626_p12 = scmp.eq.s32.totalorder %s44_s19, 0 }
   0xf   : > { %p379_p10 = pneg %p607_p8  ;;  %p54_p13 = scmp.ne.s32.totalorder %s542_s11, %s538_s10 }
  0x10   : > { %p55_p0 = scmp.eq.s32.totalorder %s546_s12, 0  ;;  %p392_p3 = scmp.lt.s32.totalorder %s546_s12, 2 }
  0x11   : > { %p622_p11 = pnand %p379_p10, %p784_p1  ;;  %s433_s25 = scalar_lea.hbm %s781_s0, 16 }
  0x12   : > { %p434_p5 = scmp.ne.s32.totalorder %s781_s0, %s433_s25  ;;  %p440_p1 = scmp.lt.u32.totalorder %s433_s25, %s781_s0 }
  0x13   : > { %p435_p7 = pneg %p622_p11 }
  0x15   : > { %p436_p10 = pnand %p435_p7, %p434_p5 }
  0x17   : > { %p437_p9 = pneg %p436_p10 }
  0x19   : > { %p442_p2 = pnand %p440_p1, %p437_p9 }
  0x1b   : > { %445 = shalt.err (!%p442_p2)
}
  0x1c   : > { %s548_s30 = smov [#allocation2]   ;;  %p56_p1 = por %p55_p0, %p54_p13 }
  0x1d   : > { %382 = dma.hbm_to_smem (!%p622_p11), %s781_s0, 16, %s548_s30, [#allocation5]  }
  0x1e   : > { %s653_s5 = scalar_select %p626_p12, %s542_s11, %s47_s20  }
  0x1f   : > { %p792_p2 = scmp.eq.s32.totalorder %s588_s13, 1  ;;  %s119_s7 = sand.u32 1, %s542_s11  }
  0x20   : > { %s369_s8 = sshll.u32 %s546_s12, 7  ;;  %s353_s14 = sshll.u32 %s119_s7, 3 }
  0x21   : > { %p665_p9 = por %p792_p2, %p54_p13  ;;  %s674_s23 = scalar_lea.hbm %s782_s1, %s369_s8 }
  0x22   : > { %s123_s20 = scalar_lea.vmem [#allocation6], %s353_s14  ;;  %p678_p11 = pnand %p392_p3, %p56_p1 }
  0x23   : > { %s793_s6 = scalar_select %p665_p9, 1, 0 }
  0x24   : > { %s131_s22 = sshll.u32 %s123_s20, 4  ;;  %s120_s25 = scalar_lea.sflag [#allocation3], %s119_s7  ;;  %s682_s22 = int_to_ptr.vmem [resolvable:$true] %s131_s22 }
  0x25   : > { %s446_s26 = scalar_lea.hbm %s674_s23, 128  ;;  %p448_p13 = pneg %p678_p11 }
  0x26   : > { %p447_p12 = scmp.ne.s32.totalorder %s674_s23, %s446_s26  ;;  %s451_s29 = scalar_lea.hbm %s782_s1, 256 }
  0x27   : > { %p452_p3 = scmp.lt.u32.totalorder %s674_s23, %s782_s1  ;;  %p453_p7 = scmp.lt.u32.totalorder %s451_s29, %s446_s26 }
  0x28   : > { %p449_p0 = pnand %p448_p13, %p447_p12  ;;  %p455_p1 = scmp.lt.u32.totalorder %s446_s26, %s674_s23 }
  0x29   : > { %p454_p10 = por %p453_p7, %p452_p3 }
  0x2a   : > { %p450_p5 = pneg %p449_p0 }
  0x2b   : > { %p456_p2 = por %p455_p1, %p454_p10 }
  0x2d   : > { %p457_p6 = pnand %p456_p2, %p450_p5 }
  0x2f   : > { %460 = shalt.err (!%p457_p6)
}
  0x30   : > { %s461_s4 = scalar_lea.vmem %s682_s22, 128  ;;  %s549_s7 = smov [#allocation6]  }
  0x31   : > { %p462_p12 = scmp.ne.s32.totalorder %s682_s22, %s461_s4  ;;  %s466_s8 = sshll.u32 %s549_s7, 4  ;;  %s467_s8 = int_to_ptr.vmem [resolvable:$false] %s466_s8 }
  0x32   : > { %s468_s14 = scalar_lea.vmem %s467_s8, 256  ;;  %p469_p4 = scmp.lt.s32.totalorder %s682_s22, %s467_s8 }
  0x33   : > { %p464_p0 = pnand %p462_p12, %p448_p13  ;;  %p470_p3 = scmp.lt.s32.totalorder %s468_s14, %s461_s4 }
  0x35   : > { %p465_p9 = pneg %p464_p0  ;;  %p471_p7 = por %p470_p3, %p469_p4 }
  0x37   : > { %p472_p10 = pnand %p471_p7, %p465_p9 }
  0x39   : > { %475 = shalt.err (!%p472_p10)
}
  0x3a   : > { %386 = dma.hbm_to_vmem [thread:$0]  (!%p678_p11), %s674_s23, 128, %s682_s22, %s120_s25  }
  0x3b   : > { %140 = sbr.rel (%p607_p8) target bundleno = 392 (0x188), region = 28  ;;  %p795_p6 = scmp.eq.s32.totalorder (!%p607_p8), %s588_s13, 0 }
  0x42   : > { %521 = dma.done.wait (%p795_p6), [#allocation5], 16   ;;  %p796_p13 = pmov %p795_p6 }
  0x43   : > { %s716_s19 = sand.u32 1, %s538_s10   ;;  %p797_p4 = scmp.ne.s32.totalorder %s787_s15, 0 }
  0x44   : > { %523 = vsyncadd (%p796_p13), [#allocation5], 4294967280  ;;  %s358_s21 = sshll.u32 %s716_s19, 3  ;;  %s147_s20 = scalar_lea.sflag [#allocation3], %s716_s19 }
  0x45   : > { %s722_s23 = scalar_lea.vmem [#allocation6], %s358_s21 }
  0x46   : > { %525 = dma.done.wait (%p797_p4), %s147_s20, 128  }
  0x47   : > { %527 = vsyncadd (%p797_p4), %s147_s20, 4294967168 }
  0x48   : > { %155 = sfence }
  0x49   : > { %v172_v0 = vld [vmem:[%s722_s23] sm:$0xf]  ;;  %v360_v1 = vld [vmem:[%s722_s23 + $0x4] sm:$0xf]  ;;  %vm177_vm0 = vcmask 1043456   ;;  %v182_v4 = vlaneseq  ;;  %s361_s17 = sld [smem:[#allocation2 + $0x1]] }
  0x4a   : > { %v176_v2 = vadd.f32 %v360_v1, %v172_v0  ;;  %s207_s22 = sld [smem:[#allocation2]]  ;;  %s362_s24 = sld [smem:[#allocation2 + $0x2]]  ;;  %vm192_vm1 = vcmask 7168   ;;  %vm204_vm4 = vcmask 23552   ;;  %v550_v37 = vmov 839922192  }
  0x4b   : > { %v183_v5 = vand.u32 127, %v182_v4  ;;  %v188_v7 = vshrl.u32 %v182_v4, 7  ;;  %v243_v38 = vunpack.c.l.s4 %v550_v37  ;;  %v240_v41 = vld [vmem:[%s722_s23] sm:$0xff]  ;;  %s370_s15 = sshll.u32 %s588_s13, 7  ;;  %s171_s25 = scalar_lea.vmem [#allocation7], %s358_s21 }
  0x4c   : > { %v178_v3 = vsel %vm177_vm0, %v176_v2, 0.0  ;;  %s267_s26 = sshll.u32 %s171_s25, 4  ;;  %s737_s29 = scalar_lea.hbm %s783_s2, %s370_s15  ;;  %s739_s26 = int_to_ptr.vmem [resolvable:$true] %s267_s26 }
  0x4d   : > { %179 = vadd.xlane.f32.xlu0 %v178_v3  ;;  %v186_v6 = vadd.s32 4294967295, %v183_v5  ;;  %v196_v8 = vadd.s32 1, %v183_v5  ;;  %vm184_vm2 = vcmp.gt.s32.totalorder %v183_v5, 0  ;;  %vm195_vm3 = vcmp.lt.s32.totalorder %v183_v5, 3  ;;  %s253_s30 = scalar_lea.sflag [#allocation4], %s716_s19  ;;  %s476_s3 = scalar_lea.vmem %s739_s26, 128 }
  0x4e   : > { %v216_v14 = vsub.s32 %v183_v5, %v188_v7  ;;  %v235_v34 = vsub.s32 3, %v188_v7  ;;  %v244_v39 = vunpack.c.0.s8 %v243_v38  ;;  %p477_p8 = scmp.ne.s32.totalorder %s739_s26, %s476_s3  ;;  %p798_p9 = scmp.ne.s32.totalorder %s793_s6, 0 }
  0x4f   : > { %v189_v9 = vsub.s32 %v186_v6, %v188_v7  ;;  %v199_v10 = vsub.s32 %v196_v8, %v188_v7  ;;  %v211_v11 = vstv %s361_s17  ;;  %s551_s13 = smov [#allocation7]  }
  0x50   : > { %v208_v19 = vstv %s207_s22  ;;  %v221_v20 = vstv %s362_s24  ;;  %v247_v40 = vsub.s32 %v244_v39, %v188_v7  ;;  %p478_p11 = pnand %p477_p8, %p798_p9  ;;  %s480_s4 = sshll.u32 %s551_s13, 4  ;;  %s481_s4 = int_to_ptr.vmem [resolvable:$false] %s480_s4 }
  0x51   : > { %s482_s7 = scalar_lea.vmem %s481_s4, 256  ;;  %p483_p1 = scmp.lt.s32.totalorder %s739_s26, %s481_s4 }
  0x52   : > { %p479_p5 = pneg %p478_p11  ;;  %p484_p2 = scmp.lt.s32.totalorder %s482_s7, %s476_s3 }
  0x54   : > { %p485_p12 = por %p484_p2, %p483_p1 }
  0x56   : > { %p486_p0 = pnand %p485_p12, %p479_p5 }
  0xda   : > { %v180_v12 = vpop.xlane.xlu0 %179 }
  0xdb   : > { %v181_v13 = vmul.f32 0.00390625, %v180_v12 }
  0xdd   : > { %v190_v15 = vrot.slane %v181_v13, %v189_v9  ;;  %v200_v16 = vrot.slane %v181_v13, %v199_v10  ;;  %v202_v17 = vrot.slane %v181_v13, 7  ;;  %v212_v18 = vmul.f32 %v211_v11, %v181_v13 }
  0xdf   : > { %v193_v21 = vsel %vm192_vm1, %v181_v13, %v190_v15  ;;  %v205_v22 = vsel %vm204_vm4, %v200_v16, %v202_v17  ;;  %v217_v26 = vrot.slane %v212_v18, %v216_v14 }
  0xe0   : > { %v194_v23 = vsel %vm184_vm2, %v193_v21, 0.0  ;;  %v206_v24 = vsel %vm195_vm3, %v205_v22, 0.0 }
  0xe1   : > { %v209_v25 = vmul.f32 %v208_v19, %v194_v23  ;;  %v222_v27 = vmul.f32 %v221_v20, %v206_v24 }
  0xe3   : > { %v219_v28 = vadd.f32 %v217_v26, %v209_v25  ;;  %v224_v29 = vrot.slane %v222_v27, 6 }
  0xe5   : > { %v226_v30 = vadd.f32 %v224_v29, %v219_v28 }
  0xe7   : > { %v363_v31 = vmul.f32 -1.442695, %v226_v30 }
  0xe9   : > { %429 = vpow2.f32 %v363_v31 }
  0xf3   : > { %v430_v32 = vpop.eup %429 }
  0xf4   : > { %v230_v33 = vadd.f32 1.0, %v430_v32 }
  0xf6   : > { %431 = vrcp.f32 %v230_v33 }
 0x100   : > { %v432_v35 = vpop.eup %431 }
 0x101   : > { %v236_v36 = vrot.slane %v432_v35, %v235_v34 }
 0x103   : > { %238 = vbcast.lane.b32.xlu0 %v236_v36, 256 }
 0x175   : > { %v239_v42 = vpop.permute.xlu0 %238 }
 0x176   : > { %v248_v43 = vrot.slane %v239_v42, %v247_v40 }
 0x178   : > { %v250_v44 = vmul.f32 %v248_v43, %v240_v41 }
 0x17a   : > { %251 = vst [vmem:[%s171_s25] sm:$0xff] %v250_v44 }
 0x17b   : > { %489 = shalt.err (!%p486_p0)
}
 0x17c   : > { %s490_s8 = scalar_lea.hbm %s737_s29, 128  ;;  %s494_s21 = scalar_lea.hbm %s783_s2, 256 }
 0x17d   : > { %p491_p3 = scmp.ne.s32.totalorder %s737_s29, %s490_s8  ;;  %p495_p6 = scmp.lt.u32.totalorder %s737_s29, %s783_s2 }
 0x17e   : > { %p496_p13 = scmp.lt.u32.totalorder %s494_s21, %s490_s8  ;;  %p498_p8 = scmp.lt.u32.totalorder %s490_s8, %s737_s29 }
 0x17f   : > { %p492_p7 = pnand %p491_p3, %p798_p9 }
 0x180   : > { %p497_p4 = por %p496_p13, %p495_p6 }
 0x181   : > { %p493_p10 = pneg %p492_p7 }
 0x182   : > { %p499_p11 = por %p498_p8, %p497_p4 }
 0x184   : > { %p500_p5 = pnand %p499_p11, %p493_p10 }
 0x186   : > { %503 = shalt.err (!%p500_p5)
}
 0x187   : > { %377 = dma.vmem_to_hbm [thread:$0]  (%p798_p9), %s739_s26, 128, %s737_s29, %s253_s30  }
 0x188 PF: > { %s279_s17 = sand.u32 1, %s534_s9   ;;  %p799_p1 = scmp.ne.s32.totalorder %s788_s16, 0 }
 0x189   : > { %p800_p2 = scmp.ge.s32.totalorder %s546_s12, 2  ;;  %s280_s22 = scalar_lea.sflag [#allocation4], %s279_s17 }
 0x18b   : > { %p388_p12 = pnand %p800_p2, %p799_p1 }
 0x18d   : > { %529 = dma.done.wait (!%p388_p12), %s280_s22, 128  }
 0x18e   : > { %531 = vsyncadd (!%p388_p12), %s280_s22, 4294967168  ;;  %p16_p0 = scmp.ge.s32.totalorder %s613_s18, 4   ;;  %s801_s9 = smov %s538_s10 }
 0x18f   : > { %s802_s10 = smov %s542_s11  ;;  %s803_s11 = smov %s653_s5 }
 0x190   : > { %s804_s12 = smov %s613_s18  ;;  %18 = sbr.rel (!%p16_p0) target bundleno = 6 (0x6), region = 79 }
 0x197   :  { %285 = vsyncpa [#allocation3], 1 }
 0x198   :  { %287 = vsyncpa [#allocation3 + $0x1], 1 }
 0x199   :  { %288 = vsyncpa [#allocation4], 1 }
 0x19a   :  { %290 = vsyncpa [#allocation4 + $0x1], 1 }
 0x19b   :  { %291 = vsyncpa [#allocation5], 1 }
 0x19c   :  { %293 = vsyncpa [#allocation5 + $0x1], 1 }

</bundles_post_ra>
